<compile_context>
chip_gen: v5e
topology: v5e:2x2
jax: 0.10.0
libtpu: 0.0.40
codegen_flags: <defaults>
</compile_context>

<pallas_src>
import jax
import jax.numpy as jnp
from jax.experimental import pallas as pl
from jax.experimental.pallas import tpu as pltpu


# ------------------------------ Pallas kernels ------------------------------

def _round_up(x, m):
    return ((x + m - 1) // m) * m


def _linear_kernel(x_ref, w_ref, b_ref, o_ref):
    # One (tm, tn) output tile: o = x_tile @ w_tile + b_tile (f32 accumulation).
    acc = jnp.dot(x_ref[...], w_ref[...], preferred_element_type=jnp.float32)
    o_ref[...] = (acc + b_ref[...]).astype(o_ref.dtype)


def _linear_tanh_kernel(x_ref, w_ref, b_ref, o_ref):
    acc = jnp.dot(x_ref[...], w_ref[...], preferred_element_type=jnp.float32)
    o_ref[...] = jnp.tanh(acc + b_ref[...]).astype(o_ref.dtype)


def pallas_linear(x, w, b, *, tm=256, tn=512, activation=None,
                  out_dtype=jnp.float32):
    """y = x @ w + b (optionally tanh), tiled (tm x tn) over (M, N).

    x: (M, K), w: (K, N), b: (N,). x / w should be bf16 for the fast MXU path;
    accumulation is always f32. Ragged M / N edges use cdiv grids + masked edge
    tiles, so no HBM padding copies or output slices are required.
    """
    M, K = x.shape
    K2, N = w.shape
    assert K == K2, (K, K2)
    b2 = b.reshape(1, N)

    tm_eff = min(tm, _round_up(M, 8))     # sublane-aligned row tile
    tn_eff = tn if N >= tn else N         # lane tile: tn is a multiple of 128,
                                          # else fall back to full (small) N dim
    grid = (pl.cdiv(N, tn_eff), pl.cdiv(M, tm_eff))   # M innermost -> weight reuse

    kernel = _linear_tanh_kernel if activation == "tanh" else _linear_kernel
    return pl.pallas_call(
        kernel,
        out_shape=jax.ShapeDtypeStruct((M, N), out_dtype),
        grid=grid,
        in_specs=[
            pl.BlockSpec((tm_eff, K), lambda j, i: (i, 0)),   # activation row tile
            pl.BlockSpec((K, tn_eff), lambda j, i: (0, j)),   # weight col tile (const over i)
            pl.BlockSpec((1, tn_eff), lambda j, i: (0, j)),   # bias col tile
        ],
        out_specs=pl.BlockSpec((tm_eff, tn_eff), lambda j, i: (i, j)),
        compiler_params=pltpu.CompilerParams(
            dimension_semantics=("parallel", "parallel"),   # shard grid across v7x TCs
            vmem_limit_bytes=48 * 1024 * 1024,              # safe under v7x 64 MiB VMEM
        ),
    )(x, w, b2)


# ------------------------------ glue (plain JAX) -----------------------------

def cross_entropy_ignore0(logits, labels):
    """CrossEntropyLoss(ignore_index=0), mean over non-ignored targets.

    The original module applies the same criterion (ignore_index=0) to both the
    word and rating heads, so we do too. Matches PyTorch's NaN on all-ignored.
    """
    logits = logits.astype(jnp.float32)
    lse = jax.nn.logsumexp(logits, axis=-1)
    picked = jnp.take_along_axis(logits, labels[:, None], axis=-1)[:, 0]
    nll = lse - picked
    mask = (labels != 0).astype(jnp.float32)
    return (nll * mask).sum() / mask.sum()
    # TODO(synk): for the training path at real shapes, fuse this CE into the word
    # matmul kernel (online logsumexp over an 'arbitrary' N axis) so the (B*S, 30522)
    # logits never round-trip through HBM.


def _uniform(key, shape, bound, dtype=jnp.float32):
    return jax.random.uniform(key, shape, jnp.float32, -bound, bound).astype(dtype)


def init_params(key, hidden, vocab, n_rating):
    """Weights that feed the MXU are stored in bf16 once at init (no per-call cast/pad)."""
    ks = jax.random.split(key, 8)
    inv = 1.0 / jnp.sqrt(hidden)
    return {
        # BERT stub params (self.bert is externally injected; stubbed below)
        "emb": _uniform(ks[0], (vocab, hidden), 0.02, jnp.bfloat16),
        "pool_w": _uniform(ks[1], (hidden, hidden), inv, jnp.bfloat16),
        "pool_b": _uniform(ks[2], (hidden,), inv, jnp.float32),
        # PretrainBERT heads (nn.Linear(bert_dim, 30522) / nn.Linear(bert_dim, 5))
        "word_w": _uniform(ks[3], (hidden, vocab), inv, jnp.bfloat16),
        "word_b": _uniform(ks[4], (vocab,), inv, jnp.float32),
        "rating_w": _uniform(ks[5], (hidden, n_rating), inv, jnp.float32),
        "rating_b": _uniform(ks[6], (n_rating,), inv, jnp.float32),
    }


def forward(params, token_ids, labels=None):
    """Mirrors PretrainBERT.forward: returns (word, rating, loss)."""
    B, S = token_ids.shape

    # TODO(synk): `self.bert` is an externally injected module not defined in the
    # original file; stubbed deterministically as embedding lookup + tanh [CLS] pooler.
    last_hidden = jnp.take(params["emb"], token_ids, axis=0)          # (B, S, H) bf16
    cls_tok = last_hidden[:, 0, :]                                    # (B, H)   bf16
    pooled = pallas_linear(cls_tok, params["pool_w"], params["pool_b"],
                           activation="tanh")                         # (B, H)   f32

    # dropout: identity at inference time (deterministic eval semantics)
    H = last_hidden.shape[-1]
    hidden2d = last_hidden.reshape(B * S, H)                          # bf16

    # word = self.word_dense(last_hidden_states); word.view(-1, vocab)
    word = pallas_linear(hidden2d, params["word_w"], params["word_b"])      # (B*S, V)
    # rating = self.rating_dense(pooled_output)  -- N=5, tiny: plain jnp is fastest
    rating = pooled @ params["rating_w"] + params["rating_b"]              # (B, 5)

    if labels is None:
        loss = None
    else:
        loss = (cross_entropy_ignore0(word, labels[0])
                + cross_entropy_ignore0(rating, labels[1]))
    return word, rating, loss


# ------------------------------------ main -----------------------------------

if __name__ == "__main__":
    B, S, H, V, R = 2, 8, 32, 30522, 5

    params = init_params(jax.random.PRNGKey(0), H, V, R)
    token_ids = jax.random.randint(jax.random.PRNGKey(1), (B, S), 0, V,
                                   dtype=jnp.int32)

    word, rating, loss = forward(params, token_ids, labels=None)
    jax.block_until_ready((word, rating))

    assert word.shape == (B * S, V), word.shape
    assert rating.shape == (B, R), rating.shape
    assert loss is None
    assert bool(jnp.isfinite(word).all()) and bool(jnp.isfinite(rating).all())

    print("KERNEL_OK")
</pallas_src>

<mosaic_0001>
module attributes {stable_mosaic.version = 11 : i64} {
  func.func @_linear_tanh_kernel(%arg0: i32, %arg1: i32, %arg2: memref<8x32xbf16, #tpu.memory_space<vmem>>, %arg3: memref<32x32xbf16, #tpu.memory_space<vmem>>, %arg4: memref<1x32xf32, #tpu.memory_space<vmem>>, %arg5: memref<8x32xf32, #tpu.memory_space<vmem>>) attributes {dimension_semantics = [#tpu.dimension_semantics<parallel>, #tpu.dimension_semantics<parallel>], iteration_bounds = array<i64: 1, 1>, scalar_prefetch = 0 : i64, scratch_operands = 0 : i64, tpu.core_type = #tpu.core_type<tc>, window_params = [{transform_indices = @transform_0, window_bounds = array<i64: 8, 32>}, {transform_indices = @transform_1, window_bounds = array<i64: 32, 32>}, {transform_indices = @transform_2, window_bounds = array<i64: 1, 32>}, {transform_indices = @transform_3, window_bounds = array<i64: 8, 32>}]} {
    %c0 = arith.constant 0 : index
    %c0_0 = arith.constant 0 : index
    %0 = vector.load %arg2[%c0, %c0_0] : memref<8x32xbf16, #tpu.memory_space<vmem>>, vector<8x32xbf16>
    %c0_1 = arith.constant 0 : index
    %c0_2 = arith.constant 0 : index
    %1 = vector.load %arg3[%c0_1, %c0_2] : memref<32x32xbf16, #tpu.memory_space<vmem>>, vector<32x32xbf16>
    %cst = arith.constant dense<0.000000e+00> : vector<8x32xf32>
    %2 = tpu.matmul %0, %1, %cst {dimension_numbers = #tpu.dot_dimension_numbers<[1], [0], [0], [1], [0, 0, 1, 1], [], []>} : vector<8x32xbf16>, vector<32x32xbf16>, vector<8x32xf32> -> vector<8x32xf32>
    %c0_3 = arith.constant 0 : index
    %c0_4 = arith.constant 0 : index
    %3 = vector.load %arg4[%c0_3, %c0_4] : memref<1x32xf32, #tpu.memory_space<vmem>>, vector<1x32xf32>
    %4 = vector.broadcast %3 : vector<1x32xf32> to vector<8x32xf32>
    %5 = arith.addf %2, %4 : vector<8x32xf32>
    %6 = math.tanh %5 : vector<8x32xf32>
    %c0_5 = arith.constant 0 : index
    %c0_6 = arith.constant 0 : index
    %7 = vector.load %arg5[%c0_5, %c0_6] : memref<8x32xf32, #tpu.memory_space<vmem>>, vector<8x32xf32>
    tpu.vector_store %arg5[%c0_5, %c0_6], %6 {strides = array<i32>} : memref<8x32xf32, #tpu.memory_space<vmem>>, vector<8x32xf32>,
    return
  }
  func.func @transform_0(%arg0: i32, %arg1: i32) -> (i32, i32) {
    %c0_i32 = arith.constant 0 : i32
    %c0_i32_0 = arith.constant 0 : i32
    return %arg1, %c0_i32 : i32, i32
  }
  func.func @transform_1(%arg0: i32, %arg1: i32) -> (i32, i32) {
    %c0_i32 = arith.constant 0 : i32
    %c0_i32_0 = arith.constant 0 : i32
    return %c0_i32, %arg0 : i32, i32
  }
  func.func @transform_2(%arg0: i32, %arg1: i32) -> (i32, i32) {
    %c0_i32 = arith.constant 0 : i32
    %c0_i32_0 = arith.constant 0 : i32
    return %c0_i32, %arg0 : i32, i32
  }
  func.func @transform_3(%arg0: i32, %arg1: i32) -> (i32, i32) {
    %c0_i32 = arith.constant 0 : i32
    return %arg1, %arg0 : i32, i32
  }
}

</mosaic_0001>

<bundles_post_ra>
// kernel: tpu_custom_call.1
= control target key start
LH: loop header
LB: loop body
LE: loop exit
PB: predicated region body
PF: predicated region fallthrough
CT: control target
= control target key end

     0   :  { %8 = vsyncpa [#allocation3], 0  ;;  %s264_s0 = inlined_call_operand.hbm [shape: bf16[2,32], index: 0, kind: input, shape index: {}]   ;;  %s265_s1 = inlined_call_operand.hbm [shape: bf16[32,32], index: 1, kind: input, shape index: {}]   ;;  %s266_s2 = inlined_call_operand.vmem [shape: f32[1,32], index: 2, kind: input, shape index: {}]   ;;  %s267_s3 = inlined_call_operand.hbm [shape: f32[2,32], index: 3, kind: output, shape index: {}]  }
   0x1   :  { %9 = vsyncpa [#allocation6], 0 }
   0x2   :  { %10 = vsyncpa [#allocation4], 0 }
   0x3   :  { %14 = vsyncadd [#allocation3], 48  ;;  %s15_s14 = sshll.u32 %s264_s0, 4  ;;  %s223_s15 = smov [#allocation2]   ;;  %s16_s14 = int_to_ptr.hbm [resolvable:$true] %s15_s14 }
   0x4   :  { %s17_s16 = sshll.u32 %s223_s15, 4  ;;  %s28_s19 = sshll.u32 %s265_s1, 4  ;;  %s18_s16 = int_to_ptr.vmem [resolvable:$true] %s17_s16  ;;  %s29_s19 = int_to_ptr.hbm [resolvable:$true] %s28_s19 }
   0x5   :  { %s224_s20 = smov 16   ;;  %s225_s21 = smov 1  }
   0x6   :  { %23 = dma.hbm_to_vmem [thread:$0]  %s16_s14, 16, %s18_s16, [#allocation3], %s224_s20, %s224_s20, %s225_s21  }
   0x7   :  { %s226_s22 = smov [#allocation5]   ;;  %s227_s24 = smov 64  }
   0x8   :  { %s30_s23 = sshll.u32 %s226_s22, 4  ;;  %s228_s25 = smov 4   ;;  %s31_s23 = int_to_ptr.vmem [resolvable:$true] %s30_s23 }
   0x9   :  { %36 = dma.hbm_to_vmem [thread:$0]  %s29_s19, 256, %s31_s23, [#allocation6], %s227_s24, %s227_s24, %s228_s25  }
   0xa   :  { %217 = dma.done.wait [#allocation3], 64  }
   0xb   :  { %218 = vsyncadd [#allocation3], 4294967232 }
   0xc   :  { %219 = dma.done.wait [#allocation6], 256  }
   0xd   :  { %220 = vsyncadd [#allocation6], 4294967040  ;;  %v132_v0 = vld [vmem:[#allocation5 + $0x8] sm:$0xff]  ;;  %v48_v1 = vld [vmem:[#allocation2] sm:$0x1]  ;;  %vm84_vm0 = vcmask 261120  }
   0xe   :  { %v131_v2 = vld [vmem:[#allocation5] sm:$0xff]  ;;  %v49_v3 = vld [vmem:[#allocation2 + $0x1] sm:$0x1]  ;;  %v50_v4 = vld [vmem:[#allocation2 + $0x2] sm:$0x1]  ;;  %93 = vmatpush.bf16.msra.mxu0 %v132_v0 }
   0xf   :  { %v51_v5 = vld [vmem:[#allocation2 + $0x3] sm:$0x1]  ;;  %61 = vst [vmem:[#allocation1] ss:$9 sm:$0xff] %v48_v1  ;;  %v142_v7 = vld [vmem:[%s266_s2] ss:$0 sm:$0xff] }
  0x10   :  { %64 = vst [vmem:[#allocation1 + $0x1] ss:$9 sm:$0xff] %v49_v3 }
  0x11   :  { %67 = vst [vmem:[#allocation1 + $0x2] ss:$9 sm:$0xff] %v50_v4 }
  0x12   :  { %70 = vst [vmem:[#allocation1 + $0x3] ss:$9 sm:$0xff] %v51_v5  ;;  %94 = vmatpush.bf16.msra.mxu0 %v131_v2 }
  0x19   :  { %v71_v6 = vld [vmem:[#allocation1] sm:$0xff] }
  0x1a   :  { %130 = vmatmul.msk.bf16.vlgmr.msra.gmra.mxu0 %vm84_vm0, %v71_v6 }
  0x97   :  { %v96_v8 = vpop.f32.mrf.mxu0 }
  0x98   :  { %v97_v9 = vadd.f32 %v142_v7, %v96_v8 }
  0x9a   :  { %143 = vtanh.f32 %v97_v9 }
  0x9f   :  { %v98_v10 = vpop.f32.mrf.mxu0 }
  0xa0   :  { %v144_v11 = vpop.eup %143 }
  0xa1   :  { %101 = vst.msk [vmem:[#allocation7] sm:$0xff] %vm84_vm0, %v144_v11 }
  0xa2   :  { %105 = vsyncadd [#allocation4], 96  ;;  %s108_s28 = sshll.u32 %s267_s3, 4  ;;  %s229_s29 = smov [#allocation7]   ;;  %s109_s28 = int_to_ptr.hbm [resolvable:$true] %s108_s28 }
  0xa3   :  { %s106_s30 = sshll.u32 %s229_s29, 4  ;;  %s230_s4 = smov 32   ;;  %s107_s30 = int_to_ptr.vmem [resolvable:$true] %s106_s30 }
  0xa4   :  { %s231_s5 = smov 2  }
  0xa5   :  { %114 = dma.vmem_to_hbm [thread:$0]  %s107_s30, 32, %s109_s28, [#allocation4], %s230_s4, %s230_s4, %s231_s5  }
  0xa6   :  { %221 = dma.done.wait [#allocation4], 128  }
  0xa7   :  { %222 = vsyncadd [#allocation4], 4294967168 }
  0xa8   :  { %119 = vsyncpa [#allocation3], 1 }
  0xa9   :  { %120 = vsyncpa [#allocation6], 1 }
  0xaa   :  { %121 = vsyncpa [#allocation4], 1 }

</bundles_post_ra>
